<compile_context>
chip_gen: v7x
topology: tpu7x:2x2x1
jax: 0.10.0
libtpu: 0.0.40
codegen_flags: <defaults>
</compile_context>

<pallas_src>
import math

import jax
import jax.numpy as jnp
import numpy as np
from jax import lax
from jax.experimental import pallas as pl
from jax.experimental.pallas import tpu as pltpu


def _agc_kernel(e_ref, x_ref, w_ref, o_ref):
    # e_ref : [N, D]             node embeddings
    # x_ref : [B*N, I]           inputs, batch-major rows (b*N + n)
    # w_ref : [2*D*I + D, O]     flattened adaptive weights with bias rows appended
    # o_ref : [B*N, O]           output rows (b*N + n)
    N, D = e_ref.shape
    B = x_ref.shape[0] // N

    # Inputs are f32 in this test; for bf16 production inputs keep the MXU operands
    # in bf16 and rely on preferred_element_type=f32 accumulation instead.
    e = e_ref[...].astype(jnp.float32)            # [N, D]
    x = x_ref[...].astype(jnp.float32)            # [B*N, I]

    # ---- batch-invariant: adj = softmax(relu(e @ e.T), -1), computed ONCE ----
    s = lax.dot_general(e, e, (((1,), (1,)), ((), ())),
                        preferred_element_type=jnp.float32)       # [N, N]
    s = jnp.maximum(s, 0.0)
    m = jnp.max(s, axis=-1, keepdims=True)
    p = jnp.exp(s - m)
    denom = jnp.sum(p, axis=-1, keepdims=True)
    # Exact normalization: denom is only [N, 1], so the VPU divide is negligible
    # and keeps the result bit-close to the reference (the approx EUP reciprocal
    # previously introduced >2e-3 relative error).
    adj = p / denom                                               # [N, N]

    # ---- y[b] = adj @ x[b]: the only genuinely per-batch matmuls (B is tiny) ----
    ys = [jnp.dot(adj, x[b * N:(b + 1) * N, :],
                  preferred_element_type=jnp.float32) for b in range(B)]
    y = jnp.concatenate(ys, axis=0)                               # [B*N, I]

    # ---- one fused MXU pass for the adaptive contraction + bias ----
    # z[r, d*2I + k*I + i] = e[r % N, d] * (y if k == 0 else x)[r, i]
    # z[r, 2*D*I + d]      = e[r % N, d]        (bias columns)
    u = jnp.concatenate([y, x], axis=-1)                          # [B*N, 2I]
    e_bn = jnp.concatenate([e] * B, axis=0)                       # [B*N, D]
    z = jnp.concatenate(
        [e_bn[:, d:d + 1] * u for d in range(D)] + [e_bn], axis=-1)  # [B*N, 2DI+D]
    acc = jnp.dot(z, w_ref[...].astype(jnp.float32),
                  preferred_element_type=jnp.float32)             # [B*N, O]

    # Output block is a single small slab written once; at production sizes pad O
    # to a multiple of 128 (or emit a [B, N*O] lane-dense slab) to avoid masked vst.
    o_ref[...] = acc.astype(o_ref.dtype)


@jax.jit
def adaptive_graph_conv(x, e, weight, bias):
    """x: [B, N, I], e: [N, D], weight: [D, 2, I, O], bias: [D, O] -> [B, N, O]."""
    B, N, I = x.shape
    D = e.shape[1]
    O = weight.shape[-1]

    x2 = x.reshape(B * N, I)                       # free, contiguous
    wf = weight.reshape(D * 2 * I, O)              # row index = d*2I + k*I + i
    wfb = jnp.concatenate([wf, bias], axis=0)      # [2*D*I + D, O], bias folded in

    K = 2 * D * I + D
    flops = (2 * N * N * D                 # e @ e.T
             + 6 * N * N                   # relu + softmax elementwise
             + B * 2 * N * N * I           # adj @ x per batch
             + B * N * 2 * I * D           # z construction multiplies
             + 2 * B * N * K * O)          # fused adaptive-weight + bias matmul
    bytes_accessed = 4 * (N * D + B * N * I + K * O + B * N * O)
    cost = pl.CostEstimate(flops=flops, transcendentals=N * N,
                           bytes_accessed=bytes_accessed)

    out2 = pl.pallas_call(
        _agc_kernel,
        out_shape=jax.ShapeDtypeStruct((B * N, O), x.dtype),
        grid_spec=pltpu.PrefetchScalarGridSpec(
            num_scalar_prefetch=0,
            grid=(1,),                                        # single step: no
            in_specs=[                                        # redundant per-batch
                pl.BlockSpec((N, D), lambda i: (0, 0)),       # recompute of adj/bias
                pl.BlockSpec((B * N, I), lambda i: (0, 0)),
                pl.BlockSpec((K, O), lambda i: (0, 0)),
            ],
            out_specs=pl.BlockSpec((B * N, O), lambda i: (0, 0)),
        ),
        compiler_params=pltpu.CompilerParams(
            dimension_semantics=("arbitrary",)),
        cost_estimate=cost,
    )(e, x2, wfb)
    return out2.reshape(B, N, O)


def reference(x, e, weight, bias):
    """Pure-JAX transcription of AdaptiveGraphConv.forward (adj=None path)."""
    adj = jax.nn.softmax(jax.nn.relu(e @ e.T), axis=-1)
    weight_adp = jnp.einsum('nd,dkio->nkio', e, weight)
    out = jnp.stack([jnp.einsum('nm,bmi->bni', adj, x), x], axis=2)
    out = jnp.einsum('bnki,nkio->bno', out, weight_adp)
    out = out + e @ bias
    return out


if __name__ == "__main__":
    # Small, module-consistent shapes.
    B, N = 2, 16          # batch, num_nodes
    I, D, O = 8, 4, 32    # input_size, emb_size, output_size

    key = jax.random.PRNGKey(0)
    kx, ke, kw, kb = jax.random.split(key, 4)

    x = jax.random.normal(kx, (B, N, I), dtype=jnp.float32)
    e = jax.random.normal(ke, (N, D), dtype=jnp.float32)

    # Deterministic parameter init (shapes from __init__): weight ~ U(-stdv, stdv).
    stdv = 1.0 / math.sqrt(O)
    weight = jax.random.uniform(kw, (D, 2, I, O), dtype=jnp.float32,
                                minval=-stdv, maxval=stdv)
    # Module zeros the bias; use small random values here to exercise the path.
    bias = 0.1 * jax.random.normal(kb, (D, O), dtype=jnp.float32)

    out = adaptive_graph_conv(x, e, weight, bias)
    out = jax.block_until_ready(out)

    ref = reference(x, e, weight, bias)
    # Exact softmax normalization restored; tolerance only needs to cover f32
    # matmul/contraction ordering differences between the kernel and XLA.
    np.testing.assert_allclose(np.asarray(out), np.asarray(ref),
                               rtol=1e-3, atol=1e-3)
    print("KERNEL_OK")
</pallas_src>

<mosaic_0001>
module attributes {stable_mosaic.version = 11 : i64} {
  func.func @_agc_kernel(%arg0: i32, %arg1: memref<16x4xf32, #tpu.memory_space<vmem>>, %arg2: memref<32x8xf32, #tpu.memory_space<vmem>>, %arg3: memref<68x32xf32, #tpu.memory_space<vmem>>, %arg4: memref<32x32xf32, #tpu.memory_space<vmem>>) attributes {dimension_semantics = [#tpu.dimension_semantics<arbitrary>], iteration_bounds = array<i64: 1>, scalar_prefetch = 0 : i64, scratch_operands = 0 : i64, tpu.core_type = #tpu.core_type<tc>, window_params = [{pipeline_mode = #tpu.pipeline_mode<synchronous>, transform_indices = @transform_0, window_bounds = array<i64: 16, 4>}, {pipeline_mode = #tpu.pipeline_mode<synchronous>, transform_indices = @transform_1, window_bounds = array<i64: 32, 8>}, {pipeline_mode = #tpu.pipeline_mode<synchronous>, transform_indices = @transform_2, window_bounds = array<i64: 68, 32>}, {pipeline_mode = #tpu.pipeline_mode<synchronous>, transform_indices = @transform_3, window_bounds = array<i64: 32, 32>}]} {
    %c0 = arith.constant 0 : index
    %c0_0 = arith.constant 0 : index
    %0 = vector.load %arg1[%c0, %c0_0] : memref<16x4xf32, #tpu.memory_space<vmem>>, vector<16x4xf32>
    %c0_1 = arith.constant 0 : index
    %c0_2 = arith.constant 0 : index
    %1 = vector.load %arg2[%c0_1, %c0_2] : memref<32x8xf32, #tpu.memory_space<vmem>>, vector<32x8xf32>
    %cst = arith.constant dense<0.000000e+00> : vector<16x16xf32>
    %2 = tpu.matmul %0, %0, %cst {dimension_numbers = #tpu.dot_dimension_numbers<[1], [1], [0], [0], [0, 0, 1, 0], [], []>} : vector<16x4xf32>, vector<16x4xf32>, vector<16x16xf32> -> vector<16x16xf32>
    %cst_3 = arith.constant 0.000000e+00 : f32
    %3 = vector.broadcast %cst_3 : f32 to vector<16x16xf32>
    %4 = arith.maximumf %2, %3 : vector<16x16xf32>
    %cst_4 = arith.constant dense<0xFF800000> : vector<16xf32>
    %5 = vector.multi_reduction <maximumf>, %4, %cst_4 [1] : vector<16x16xf32> to vector<16xf32>
    %6 = vector.shape_cast %5 : vector<16xf32> to vector<16x1xf32>
    %7 = vector.broadcast %6 : vector<16x1xf32> to vector<16x16xf32>
    %8 = arith.subf %4, %7 : vector<16x16xf32>
    %9 = math.exp %8 : vector<16x16xf32>
    %cst_5 = arith.constant dense<0.000000e+00> : vector<16xf32>
    %10 = vector.multi_reduction <add>, %9, %cst_5 [1] : vector<16x16xf32> to vector<16xf32>
    %11 = vector.shape_cast %10 : vector<16xf32> to vector<16x1xf32>
    %12 = vector.broadcast %11 : vector<16x1xf32> to vector<16x16xf32>
    %13 = arith.divf %9, %12 : vector<16x16xf32>
    %14 = vector.extract_strided_slice %1 {offsets = [0, 0], sizes = [16, 8], strides = [1, 1]} : vector<32x8xf32> to vector<16x8xf32>
    %cst_6 = arith.constant dense<0.000000e+00> : vector<16x8xf32>
    %15 = tpu.matmul %13, %14, %cst_6 {dimension_numbers = #tpu.dot_dimension_numbers<[1], [0], [0], [1], [0, 0, 1, 1], [], []>} : vector<16x16xf32>, vector<16x8xf32>, vector<16x8xf32> -> vector<16x8xf32>
    %16 = vector.extract_strided_slice %1 {offsets = [16, 0], sizes = [16, 8], strides = [1, 1]} : vector<32x8xf32> to vector<16x8xf32>
    %cst_7 = arith.constant dense<0.000000e+00> : vector<16x8xf32>
    %17 = tpu.matmul %13, %16, %cst_7 {dimension_numbers = #tpu.dot_dimension_numbers<[1], [0], [0], [1], [0, 0, 1, 1], [], []>} : vector<16x16xf32>, vector<16x8xf32>, vector<16x8xf32> -> vector<16x8xf32>
    %18 = tpu.concatenate %15, %17 in 0 : vector<16x8xf32>, vector<16x8xf32> -> vector<32x8xf32>
    %19 = tpu.concatenate %18, %1 in 1 : vector<32x8xf32>, vector<32x8xf32> -> vector<32x16xf32>
    %20 = tpu.concatenate %0, %0 in 0 : vector<16x4xf32>, vector<16x4xf32> -> vector<32x4xf32>
    %21 = vector.extract_strided_slice %20 {offsets = [0, 0], sizes = [32, 1], strides = [1, 1]} : vector<32x4xf32> to vector<32x1xf32>
    %22 = vector.broadcast %21 : vector<32x1xf32> to vector<32x16xf32>
    %23 = arith.mulf %22, %19 : vector<32x16xf32>
    %24 = vector.extract_strided_slice %20 {offsets = [0, 1], sizes = [32, 1], strides = [1, 1]} : vector<32x4xf32> to vector<32x1xf32>
    %25 = vector.broadcast %24 : vector<32x1xf32> to vector<32x16xf32>
    %26 = arith.mulf %25, %19 : vector<32x16xf32>
    %27 = vector.extract_strided_slice %20 {offsets = [0, 2], sizes = [32, 1], strides = [1, 1]} : vector<32x4xf32> to vector<32x1xf32>
    %28 = vector.broadcast %27 : vector<32x1xf32> to vector<32x16xf32>
    %29 = arith.mulf %28, %19 : vector<32x16xf32>
    %30 = vector.extract_strided_slice %20 {offsets = [0, 3], sizes = [32, 1], strides = [1, 1]} : vector<32x4xf32> to vector<32x1xf32>
    %31 = vector.broadcast %30 : vector<32x1xf32> to vector<32x16xf32>
    %32 = arith.mulf %31, %19 : vector<32x16xf32>
    %33 = tpu.concatenate %23, %26, %29, %32, %20 in 1 : vector<32x16xf32>, vector<32x16xf32>, vector<32x16xf32>, vector<32x16xf32>, vector<32x4xf32> -> vector<32x68xf32>
    %c0_8 = arith.constant 0 : index
    %c0_9 = arith.constant 0 : index
    %34 = vector.load %arg3[%c0_8, %c0_9] : memref<68x32xf32, #tpu.memory_space<vmem>>, vector<68x32xf32>
    %cst_10 = arith.constant dense<0.000000e+00> : vector<32x32xf32>
    %35 = tpu.matmul %33, %34, %cst_10 {dimension_numbers = #tpu.dot_dimension_numbers<[1], [0], [0], [1], [0, 0, 1, 1], [], []>} : vector<32x68xf32>, vector<68x32xf32>, vector<32x32xf32> -> vector<32x32xf32>
    %c0_11 = arith.constant 0 : index
    %c0_12 = arith.constant 0 : index
    %36 = vector.load %arg4[%c0_11, %c0_12] : memref<32x32xf32, #tpu.memory_space<vmem>>, vector<32x32xf32>
    tpu.vector_store %arg4[%c0_11, %c0_12], %35 {strides = array<i32>} : memref<32x32xf32, #tpu.memory_space<vmem>>, vector<32x32xf32>,
    return
  }
  func.func @transform_0(%arg0: i32) -> (i32, i32) {
    %c0_i32 = arith.constant 0 : i32
    %c0_i32_0 = arith.constant 0 : i32
    %c0_i32_1 = arith.constant 0 : i32
    return %c0_i32, %c0_i32_0 : i32, i32
  }
  func.func @transform_1(%arg0: i32) -> (i32, i32) {
    %c0_i32 = arith.constant 0 : i32
    %c0_i32_0 = arith.constant 0 : i32
    %c0_i32_1 = arith.constant 0 : i32
    return %c0_i32, %c0_i32_0 : i32, i32
  }
  func.func @transform_2(%arg0: i32) -> (i32, i32) {
    %c0_i32 = arith.constant 0 : i32
    %c0_i32_0 = arith.constant 0 : i32
    %c0_i32_1 = arith.constant 0 : i32
    return %c0_i32, %c0_i32_0 : i32, i32
  }
  func.func @transform_3(%arg0: i32) -> (i32, i32) {
    %c0_i32 = arith.constant 0 : i32
    %c0_i32_0 = arith.constant 0 : i32
    %c0_i32_1 = arith.constant 0 : i32
    return %c0_i32, %c0_i32_0 : i32, i32
  }
}

</mosaic_0001>

<bundles_post_ra>
// kernel: adaptive_graph_conv.1
= control target key start
LH: loop header
LB: loop body
LE: loop exit
PB: predicated region body
PF: predicated region fallthrough
CT: control target
= control target key end

     0   :  { %vm21_vm0 = vcmask 31744   ;;  %s871_s0 = inlined_call_operand.vmem [shape: f32[16,4], index: 0, kind: input, shape index: {}]   ;;  %s872_s1 = inlined_call_operand.vmem [shape: f32[32,8], index: 1, kind: input, shape index: {}]   ;;  %s873_s2 = inlined_call_operand.vmem [shape: f32[68,32], index: 2, kind: input, shape index: {}]   ;;  %s874_s3 = inlined_call_operand.hbm [shape: f32[32,32], index: 3, kind: output, shape index: {}]  }
   0x1   :  { %v754_v0 = vld [vmem:[%s871_s0] sm:$0xff]  ;;  %v759_v1 = vld [vmem:[%s871_s0 + $0x8] sm:$0xff] }
   0x2   :  { %8 = vsyncpa [#allocation3], 0  ;;  %v640_v2 = vpack.c.bf16 %v759_v1, %v754_v0  ;;  %599 = vmatprep.mubr.msk.f32.mxu1 %vm21_vm0, %v754_v0  ;;  %vm105_vm2 = vcmask 130048   ;;  %v17_v19 = vld [vmem:[%s872_s1] sm:$0xff]  ;;  %v18_v20 = vld [vmem:[%s872_s1 + $0x8] sm:$0xff]  ;;  %v720_v25 = vmov 1  }
   0x3   :  { %vm641_vm1 = vmpackc.low %vm21_vm0, %vm21_vm0  ;;  %v646_v21 = vpack.c.bf16 %v18_v20, %v17_v19  ;;  %v19_v22 = vld [vmem:[%s872_s1 + $0x10] sm:$0xff]  ;;  %v20_v23 = vld [vmem:[%s872_s1 + $0x18] sm:$0xff]  ;;  %682 = vset.pattern.permute.xlu1 %v720_v25  ;;  %681 = vset.pattern.permute.xlu0 %v720_v25  ;;  %v721_v26 = vmov 2   ;;  %s722_s23 = smov 8   ;;  %v723_v27 = vmov 0   ;;  %v724_v28 = vmov 3  }
   0x4   :  { %642 = vmatprep.subr.msk.bf16.mxu1 %vm641_vm1, %v640_v2  ;;  %v650_v24 = vpack.c.bf16 %v20_v23, %v19_v22  ;;  %s725_s1 = smov 64   ;;  %v426_v35 = vld [vmem:[%s873_s2] sm:$0xff]  ;;  %v427_v36 = vld [vmem:[%s873_s2 + $0x8] sm:$0xff]  ;;  %v428_v43 = vld [vmem:[%s873_s2 + $0x10] sm:$0xff]  ;;  %vm300_vm3 = vcmask 64512   ;;  %s726_s13 = smov 16  }
   0x5   :  { %645 = vmatpush3.bf16.xpose.msk.msra.mxu1 %vm641_vm1, %v640_v2  ;;  %v654_v37 = vpack.c.bf16 %v427_v36, %v426_v35  ;;  %v429_v44 = vld [vmem:[%s873_s2 + $0x18] sm:$0xff]  ;;  %v430_v47 = vld [vmem:[%s873_s2 + $0x20] sm:$0xff]  ;;  %v431_v48 = vld [vmem:[%s873_s2 + $0x28] sm:$0xff]  ;;  %vm448_vm4 = vcmask 1043456   ;;  %s727_s0 = smov 32   ;;  %s728_s16 = smov 48  }
   0x6   :  { %647 = vmatprep.subr.bf16.mxu1 %v646_v21  ;;  %v658_v45 = vpack.c.bf16 %v429_v44, %v428_v43  ;;  %v662_v49 = vpack.c.bf16 %v431_v48, %v430_v47  ;;  %v432_v50 = vld [vmem:[%s873_s2 + $0x30] sm:$0xff]  ;;  %v433_v51 = vld [vmem:[%s873_s2 + $0x38] sm:$0xff]  ;;  %v434_v61 = vld [vmem:[%s873_s2 + $0x40] sm:$0xf]  ;;  %vm411_vm5 = vcmask 261120   ;;  %vm416_vm6 = vcmask 392192  }
   0x7   :  { %655 = vmatprep.subr.bf16.mxu0 %v654_v37  ;;  %v666_v54 = vpack.c.bf16 %v433_v51, %v432_v50  ;;  %vm421_vm7 = vcmask 523264   ;;  %vm435_vm8 = vcmask 556032   ;;  %s729_s2 = smov [#allocation2]  }
   0x8   :  { %657 = vmatpush3.bf16.msra.mxu0 %v654_v37  ;;  %s546_s17 = sshll.u32 %s729_s2, 4  ;;  %s547_s17 = int_to_ptr.vmem [resolvable:$true] %s546_s17 }
   0x9   :  { %659 = vmatprep.subr.bf16.mxu0 %v658_v45  ;;  %s696_s18 = scalar_lea.vmem %s547_s17, 512  ;;  %p701_p1 = scmp.lt.s32.totalorder %s547_s17, %s547_s17 }
   0xa   :  { %p697_p0 = scmp.ne.s32.totalorder %s547_s17, %s696_s18  ;;  %p702_p2 = scmp.lt.s32.totalorder %s696_s18, %s696_s18 }
   0xc   :  { %600 = vmatmul.mubr.msk.f32.vlgmr.msra.gmra.mrb[0].mxu1 %vm21_vm0, %v759_v1  ;;  %661 = vmatpush3.bf16.msra.mxu0 %v658_v45  ;;  %p703_p3 = por %p702_p2, %p701_p1 }
   0xd   :  { %649 = vmatpush3.bf16.msra.mxu1 %v646_v21  ;;  %663 = vmatprep.subr.bf16.mxu0 %v662_v49 }
   0xe   :  { %651 = vmatprep.subr.bf16.mxu1 %v650_v24  ;;  %p704_p4 = pnand %p703_p3, %p697_p0 }
  0x10   :  { %665 = vmatpush3.bf16.msra.mxu0 %v662_v49 }
  0x11   :  { %667 = vmatprep.subr.bf16.mxu0 %v666_v54 }
  0x14   :  { %669 = vmatpush3.bf16.msra.mxu0 %v666_v54 }
  0x15   :  { %632 = vmatprep.subr.msk.mxu0 %vm448_vm4, %v434_v61 }
  0x18   :  { %633 = vmatpush3.msk.msra.mxu0 %vm448_vm4, %v434_v61 }
  0xdf   :  { %v601_v3 = vpop.f32.mrb[0].mxu1 }
  0xe0   :  { %v94_v4 = vpop.f32.mrb[1].mxu1  ;;  %v104_v6 = vmax.f32 %v601_v3, 0.0 }
  0xe1   :  { %v103_v5 = vmax.f32 %v94_v4, 0.0 }
  0xe2   :  { %v109_v8 = vsel %vm105_vm2, %v104_v6, -inf }
  0xe3   :  { %v106_v7 = vsel %vm105_vm2, %v103_v5, -inf }
  0xe4   :  { %107 = vmax.xlane.f32.xlu0 %v106_v7 }
  0xe8   :  { %110 = vmax.xlane.f32.xlu0 %v109_v8 }
  0xfe   :  { %318 = vperm.xlu0 %681, %v754_v0  }
 0x102   :  { %294 = vrot.lane.b32.xlu0 %v20_v23, %s722_s23 }
 0x103   :  { %686 = vset.pattern.permute.xlu0 %v723_v27 }
 0x106   :  { %310 = vperm.xlu0 %686, %v759_v1  }
 0x10a   :  { %687 = vset.pattern.permute.xlu0 %v724_v28 }
 0x10b   :  { %401 = vrot.lane.b32.xlu0 %v754_v0, %s725_s1 }
 0x10f   :  { %403 = vrot.lane.b32.xlu0 %v759_v1, %s725_s1 }
 0x171   :  { %v108_v9 = vpop.xlane.xlu0 %107 }
 0x172   :  { %v112_v10 = vsub.f32 %v103_v5, %v108_v9 }
 0x174   :  { %v114_v11 = vmul.f32 1.442695, %v112_v10 }
 0x175   :  { %v111_v12 = vpop.xlane.xlu0 %110 }
 0x176   :  { %688 = vpow2.f32 %v114_v11  ;;  %v113_v13 = vsub.f32 %v104_v6, %v111_v12 }
 0x178   :  { %v116_v14 = vmul.f32 1.442695, %v113_v13 }
 0x17a   :  { %690 = vpow2.f32 %v116_v14 }
 0x17d   :  { %v319_v2 = vpop.permute.xlu0 %318 }
 0x180   :  { %v689_v15 = vpop.eup %688 }
 0x181   :  { %v118_v16 = vsel %vm105_vm2, %v689_v15, 0.0  ;;  %v295_v6 = vpop.permute.xlu0 %294 }
 0x182   :  { %119 = vadd.xlane.f32.xlu1 %v118_v16 }
 0x184   :  { %v691_v17 = vpop.eup %690 }
 0x185   :  { %v121_v18 = vsel %vm105_vm2, %v691_v17, 0.0  ;;  %v311_v14 = vpop.permute.xlu0 %310 }
 0x186   :  { %122 = vadd.xlane.f32.xlu1 %v121_v18 }
 0x189   :  { %v402_v16 = vpop.permute.xlu0 %401 }
 0x18d   :  { %v404_v18 = vpop.permute.xlu0 %403 }
 0x197   :  { %322 = vperm.xlu1 %682, %v759_v1  }
 0x19b   :  { %683 = vset.pattern.permute.xlu1 %v721_v26 }
 0x19c   :  { %330 = vperm.xlu1 %683, %v754_v0  }
 0x1a0   :  { %334 = vperm.xlu1 %683, %v759_v1  }
 0x1a4   :  { %684 = vset.pattern.permute.xlu1 %v724_v28 }
 0x1a5   :  { %342 = vperm.xlu1 %684, %v754_v0  }
 0x1a9   :  { %346 = vperm.xlu1 %684, %v759_v1  }
 0x1ad   :  { %288 = vrot.lane.b32.xlu1 %v17_v19, %s722_s23 }
 0x1ae   :  { %685 = vset.pattern.permute.xlu1 %v723_v27 }
 0x1b1   :  { %290 = vrot.lane.b32.xlu1 %v18_v20, %s722_s23 }
 0x1b5   :  { %292 = vrot.lane.b32.xlu1 %v19_v22, %s722_s23 }
 0x1b9   :  { %306 = vperm.xlu1 %685, %v754_v0  }
 0x20f   :  { %v120_v29 = vpop.xlane.xlu1 %119 }
 0x210   :  { %692 = vrcp.f32 %v120_v29 }
 0x213   :  { %v123_v30 = vpop.xlane.xlu1 %122 }
 0x214   :  { %694 = vrcp.f32 %v123_v30 }
 0x217   :  { %v323_v38 = vpop.permute.xlu1 %322 }
 0x21a   :  { %v693_v31 = vpop.eup %692 }
 0x21b   :  { %v125_v32 = vmul.f32 %v693_v31, %v689_v15  ;;  %v331_v39 = vpop.permute.xlu1 %330 }
 0x21d   :  { %606 = vmatprep.mubr.msk.f32.mxu1 %vm105_vm2, %v125_v32 }
 0x21e   :  { %v695_v33 = vpop.eup %694 }
 0x21f   :  { %v127_v34 = vmul.f32 %v695_v33, %v691_v17  ;;  %v335_v40 = vpop.permute.xlu1 %334 }
 0x221   :  { %607 = vmatmul.mubr.msk.f32.vlgmr.msra.gmra.mrb[2].mxu1 %vm105_vm2, %v127_v34 }
 0x222   :  { %653 = vmatpush3.bf16.msra.mxu1 %v650_v24  ;;  %613 = vmatprep.mubr.msk.f32.mxu1 %vm105_vm2, %v125_v32 }
 0x224   :  { %v343_v41 = vpop.permute.xlu1 %342 }
 0x225   :  { %614 = vmatmul.mubr.msk.f32.vlgmr.msra.gmra.mrb[4].mxu1 %vm105_vm2, %v127_v34 }
 0x228   :  { %v347_v42 = vpop.permute.xlu1 %346 }
 0x22c   :  { %v289_v46 = vpop.permute.xlu1 %288 }
 0x230   :  { %v291_v52 = vpop.permute.xlu1 %290 }
 0x234   :  { %v293_v0 = vpop.permute.xlu1 %292 }
 0x238   :  { %v307_v15 = vpop.permute.xlu1 %306 }
 0x2f4   :  { %v608_v53 = vpop.f32.mrb[2].mxu1 }
 0x2f5   :  { %v302_v55 = vsel %vm300_vm3, %v608_v53, %v291_v52  ;;  %v200_v56 = vpop.f32.mrb[3].mxu1 }
 0x2f6   :  { %v301_v57 = vsel %vm300_vm3, %v200_v56, %v289_v46  ;;  %v326_v58 = vmul.f32 %v323_v38, %v302_v55  ;;  %v338_v63 = vmul.f32 %v335_v40, %v302_v55  ;;  %v350_v4 = vmul.f32 %v347_v42, %v302_v55 }
 0x2f7   :  { %v337_v59 = vmul.f32 %v331_v39, %v301_v57  ;;  %v349_v1 = vmul.f32 %v343_v41, %v301_v57  ;;  %v325_v7 = vmul.f32 %v319_v2, %v301_v57  ;;  %v314_v22 = vmul.f32 %v311_v14, %v302_v55 }
 0x2f8   :  { %v615_v60 = vpop.f32.mrb[4].mxu1  ;;  %359 = vrot.lane.b32.xlu1 %v326_v58, %s726_s13  ;;  %v313_v23 = vmul.f32 %v307_v15, %v301_v57 }
 0x2f9   :  { %v275_v62 = vpop.f32.mrb[5].mxu1  ;;  %373 = vrot.lane.b32.xlu0 %v337_v59, %s727_s0  ;;  %v304_v8 = vsel %vm300_vm3, %v615_v60, %v295_v6 }
 0x2fa   :  { %v303_v3 = vsel %vm300_vm3, %v275_v62, %v293_v0  ;;  %v328_v10 = vmul.f32 %v323_v38, %v304_v8  ;;  %v340_v11 = vmul.f32 %v335_v40, %v304_v8  ;;  %v352_v13 = vmul.f32 %v347_v42, %v304_v8 }
 0x2fb   :  { %v339_v5 = vmul.f32 %v331_v39, %v303_v3  ;;  %v351_v9 = vmul.f32 %v343_v41, %v303_v3  ;;  %v327_v12 = vmul.f32 %v319_v2, %v303_v3  ;;  %v315_v37 = vmul.f32 %v307_v15, %v303_v3 }
 0x2fc   :  { %375 = vrot.lane.b32.xlu1 %v338_v63, %s727_s0  ;;  %v316_v39 = vmul.f32 %v311_v14, %v304_v8 }
 0x2fd   :  { %389 = vrot.lane.b32.xlu0 %v349_v1, %s728_s16 }
 0x300   :  { %391 = vrot.lane.b32.xlu1 %v350_v4, %s728_s16 }
 0x301   :  { %377 = vrot.lane.b32.xlu0 %v339_v5, %s727_s0 }
 0x304   :  { %357 = vrot.lane.b32.xlu1 %v325_v7, %s726_s13 }
 0x305   :  { %393 = vrot.lane.b32.xlu0 %v351_v9, %s728_s16 }
 0x308   :  { %363 = vrot.lane.b32.xlu1 %v328_v10, %s726_s13 }
 0x30c   :  { %379 = vrot.lane.b32.xlu1 %v340_v11, %s727_s0 }
 0x310   :  { %361 = vrot.lane.b32.xlu1 %v327_v12, %s726_s13 }
 0x314   :  { %395 = vrot.lane.b32.xlu1 %v352_v13, %s728_s16 }
 0x36a   :  { %v360_v17 = vpop.permute.xlu1 %359 }
 0x36b   :  { %v374_v20 = vpop.permute.xlu0 %373  ;;  %v408_v24 = vsel %vm105_vm2, %v314_v22, %v360_v17 }
 0x36e   :  { %v376_v19 = vpop.permute.xlu1 %375 }
 0x36f   :  { %v413_v26 = vsel %vm411_vm5, %v408_v24, %v376_v19  ;;  %v390_v28 = vpop.permute.xlu0 %389 }
 0x372   :  { %v392_v21 = vpop.permute.xlu1 %391 }
 0x373   :  { %v418_v29 = vsel %vm416_vm6, %v413_v26, %v392_v21  ;;  %v378_v35 = vpop.permute.xlu0 %377 }
 0x374   :  { %v423_v34 = vsel %vm421_vm7, %v418_v29, %v404_v18 }
 0x376   :  { %v358_v25 = vpop.permute.xlu1 %357 }
 0x377   :  { %v407_v27 = vsel %vm105_vm2, %v313_v23, %v358_v25  ;;  %v394_v41 = vpop.permute.xlu0 %393 }
 0x378   :  { %v412_v30 = vsel %vm411_vm5, %v407_v27, %v374_v20 }
 0x379   :  { %v417_v31 = vsel %vm416_vm6, %v412_v30, %v390_v28 }
 0x37a   :  { %v364_v32 = vpop.permute.xlu1 %363  ;;  %v422_v33 = vsel %vm421_vm7, %v417_v31, %v402_v16 }
 0x37b   :  { %634 = vmatprep.mubr.msk.f32.mxu0 %vm435_vm8, %v422_v33  ;;  %v410_v43 = vsel %vm105_vm2, %v316_v39, %v364_v32 }
 0x37c   :  { %635 = vmatmul.mubr.msk.f32.vlgmr.msra.gmra.mrb[0].mxu0 %vm435_vm8, %v423_v34 }
 0x37e   :  { %v380_v36 = vpop.permute.xlu1 %379 }
 0x37f   :  { %v415_v45 = vsel %vm411_vm5, %v410_v43, %v380_v36 }
 0x382   :  { %v362_v38 = vpop.permute.xlu1 %361 }
 0x383   :  { %v409_v40 = vsel %vm105_vm2, %v315_v37, %v362_v38 }
 0x384   :  { %v414_v42 = vsel %vm411_vm5, %v409_v40, %v378_v35 }
 0x385   :  { %v419_v44 = vsel %vm416_vm6, %v414_v42, %v394_v41 }
 0x386   :  { %v396_v46 = vpop.permute.xlu1 %395  ;;  %v424_v47 = vsel %vm421_vm7, %v419_v44, %v402_v16 }
 0x387   :  { %v420_v48 = vsel %vm416_vm6, %v415_v45, %v396_v46  ;;  %637 = vmatprep.mubr.msk.f32.mxu0 %vm435_vm8, %v424_v47 }
 0x388   :  { %v425_v49 = vsel %vm421_vm7, %v420_v48, %v404_v18 }
 0x389   :  { %638 = vmatmul.mubr.msk.f32.gmra.mrb[2].mxu0 %vm435_vm8, %v425_v49 }
 0x44f   :  { %v636_v50 = vpop.f32.mrb[0].mxu0 }
 0x450   :  { %538 = vst.msk [vmem:[#allocation2 + $0x8] sm:$0xff] %vm411_vm5, %v636_v50  ;;  %v518_v51 = vpop.f32.mrb[1].mxu0 }
 0x451   :  { %537 = vst.msk [vmem:[#allocation2] sm:$0xff] %vm411_vm5, %v518_v51 }
 0x45c   :  { %v639_v52 = vpop.f32.mrb[2].mxu0 }
 0x45d   :  { %540 = vst.msk [vmem:[#allocation2 + $0x18] sm:$0xff] %vm411_vm5, %v639_v52  ;;  %v528_v53 = vpop.f32.mrb[3].mxu0 }
 0x45e   :  { %539 = vst.msk [vmem:[#allocation2 + $0x10] sm:$0xff] %vm411_vm5, %v528_v53 }
 0x45f   :  { %707 = shalt.err (!%p704_p4)
}
 0x460   :  { %s708_s21 = scalar_lea.hbm %s874_s3, 512 }
 0x461   :  { %p709_p5 = scmp.ne.s32.totalorder %s874_s3, %s708_s21  ;;  %p712_p6 = scmp.lt.u32.totalorder %s708_s21, %s874_s3 }
 0x463   :  { %p714_p7 = pnand %p712_p6, %p709_p5 }
 0x465   :  { %717 = shalt.err (!%p714_p7)
}
 0x466   :  { %s730_s26 = smov 128  }
 0x467   :  { %552 = dma.vmem_to_hbm [thread:$0]  %s547_s17, 512, %s874_s3, [#allocation3], %s730_s26, %s730_s26, %s722_s23  }
 0x468   :  { %718 = dma.done.wait [#allocation3], 512  }
 0x469   :  { %719 = vsyncadd [#allocation3], 4294966784 }
 0x46a   :  { %556 = vsyncpa [#allocation3], 1 }

</bundles_post_ra>
